<compile_context>
chip_gen: v6e
topology: v6e:2x2x1
jax: 0.10.0
libtpu: 0.0.40
codegen_flags: <defaults>
</compile_context>

<pallas_src>
import jax
import jax.numpy as jnp
from jax.experimental import pallas as pl
from jax.experimental.pallas import tpu as pltpu

# Small, module-consistent shapes.
S = 8            # sequence length (softmax axis, dim=0 in torch)
B = 2            # batch (= input.size(1) > 1 -> second return is raw logits (B, S))
INPUT_SIZE = 16
HIDDEN = 32
H2 = HIDDEN // 2
H4 = HIDDEN // 4
LANES = 128
FUSE_W = H2 + 1 + S   # 25 meaningful lanes in the fused output tile

# ---- packed-parameter layout (rows 8-aligned, 32 columns) --------------------
R_W1 = 0      # w_mlp   (INPUT_SIZE, HIDDEN)   rows 0..15
R_B1 = 16     # b_mlp   (1, HIDDEN)            row 16
R_W2 = 24     # w_mlp1  (HIDDEN, H2)           rows 24..55
R_B2 = 56     # b_mlp1  (1, H2)                row 56
R_W3 = 64     # w_att   (H2, H4)               rows 64..79
R_B3 = 80     # b_att   (1, H4)                row 80
R_W4 = 88     # row 88: cols 0..H4-1 = w_att1^T, col H4 = b_att1
R_GB = 96     # gb8 (8, S*B): rows 0..B-1 batch-selection 0/1, rows B..7 zero
R_GS = 104    # gs  (S*B, S): sequence-selection 0/1 matrix   rows 104..119
PACK_ROWS = 120
PACK_COLS = HIDDEN  # 32


def _feature_att_kernel(x_ref, p_ref, out_ref):
    """Whole forward pass for all S*B rows in one invocation (shapes are tiny)."""
    x = x_ref[...]                                        # (S*B, Din), row r = s*B + b

    # Packed weights / biases / constant selection matrices (single DMA'd operand).
    w1 = p_ref[R_W1:R_W1 + INPUT_SIZE, :]                 # (Din, H)
    b1 = p_ref[R_B1:R_B1 + 1, :]                          # (1, H)
    w2 = p_ref[R_W2:R_W2 + HIDDEN, :H2]                   # (H, H/2)
    b2 = p_ref[R_B2:R_B2 + 1, :H2]                        # (1, H/2)
    w3 = p_ref[R_W3:R_W3 + H2, :H4]                       # (H/2, H/4)
    b3 = p_ref[R_B3:R_B3 + 1, :H4]                        # (1, H/4)
    r4 = p_ref[R_W4:R_W4 + 1, :]                          # (1, H): [w_att1^T | b_att1 | 0...]
    w4 = r4[:, :H4]                                       # (1, H/4)
    b4 = r4[:, H4:H4 + 1]                                 # (1, 1)
    gb8 = p_ref[R_GB:R_GB + 8, :S * B]                    # (8, S*B): gb8[b, r] = [r % B == b]
    gs = p_ref[R_GS:R_GS + S * B, :S]                     # (S*B, S): gs[r, s] = [r // B == s]

    # All four Linear layers over the full (S*B, .) block — single MXU passes.
    h1 = jnp.dot(x, w1, preferred_element_type=jnp.float32) + b1             # (S*B, H)
    h2 = jnp.dot(h1, w2, preferred_element_type=jnp.float32) + b2            # (S*B, H/2)
    a = jnp.tanh(jnp.dot(h2, w3, preferred_element_type=jnp.float32) + b3)   # (S*B, H/4)
    # att1 (output width 1): VPU multiply + lane reduction instead of an N=1 MXU matmul.
    logits = jnp.sum(a * w4, axis=-1, keepdims=True) + b4                    # (S*B, 1)

    # exp with a global-max shift. Algebraically exact per column (softmax is
    # shift-invariant); numerically safe here because logits are tanh-bounded
    # (|logit| <= ||w_att1||_1 + |b_att1|), so column scales cannot diverge.
    e = jnp.exp(logits - jnp.max(logits))                                    # (S*B, 1)

    # ONE selection matmul produces numerator, denominator and permuted raw
    # logits directly in a lane-dense (8, 128) tile:
    #   lanes [0, H2)           : per-batch attention-weighted sum of h2 (pre-normalize)
    #   lane  H2                : per-batch softmax denominator
    #   lanes [H2+1, H2+1+S)    : raw att1 logits rearranged to (B, S)
    cat = jnp.concatenate(
        [e * h2,                                                              # (S*B, H2)
         e,                                                                   # (S*B, 1)
         logits * gs,                                                         # (S*B, S)
         jnp.zeros((S * B, LANES - FUSE_W), jnp.float32)],                    # lane padding
        axis=-1)                                                              # (S*B, 128)
    fused = jnp.dot(gb8, cat, preferred_element_type=jnp.float32)             # (8, 128)

    # Pool-then-normalize: divide only the numerator lanes by the per-batch
    # denominator (exact division; padding rows b >= B have den == 0 -> keep 0).
    den = fused[:, H2:H2 + 1]                                                 # (8, 1)
    inv = 1.0 / jnp.where(den == 0.0, 1.0, den)                               # (8, 1)
    lane = jax.lax.broadcasted_iota(jnp.int32, (8, LANES), 1)
    out_ref[...] = fused * jnp.where(lane < H2, inv, 1.0)                     # dense (8,128) store


def feature_att_net(x_sbd, p_packed):
    """x_sbd: (S, B, INPUT_SIZE) float32.  Returns (output1, output_perm, l1)."""
    # Contiguous collapse of the leading dims (no transpose, no data movement).
    x2d = x_sbd.reshape(S * B, INPUT_SIZE)

    fused = pl.pallas_call(
        _feature_att_kernel,
        in_specs=[
            pl.BlockSpec(memory_space=pltpu.MemorySpace.VMEM),
            pl.BlockSpec(memory_space=pltpu.MemorySpace.VMEM),
        ],
        out_specs=pl.BlockSpec(memory_space=pltpu.MemorySpace.VMEM),
        out_shape=jax.ShapeDtypeStruct((8, LANES), jnp.float32),
    )(x2d, p_packed)

    # Cheap XLA slices to split the fused tile.
    out1 = fused[:B, :H2][None]                        # (1, B, H/2) attention-pooled h2
    logits_bs = fused[:B, H2 + 1:H2 + 1 + S]           # (B, S)      raw logits, permuted
    # torch.norm(softmax(dim=0), p=1) == B exactly (each column sums to 1, all >= 0).
    l1_reg = jnp.asarray(B, dtype=jnp.float32)
    return out1, logits_bs, l1_reg


def pack_params(p):
    """Pack all weights/biases + constant selection matrices into one (120, 32) operand."""
    P = jnp.zeros((PACK_ROWS, PACK_COLS), jnp.float32)
    P = P.at[R_W1:R_W1 + INPUT_SIZE, :HIDDEN].set(p["w_mlp"])
    P = P.at[R_B1, :HIDDEN].set(p["b_mlp"][0])
    P = P.at[R_W2:R_W2 + HIDDEN, :H2].set(p["w_mlp1"])
    P = P.at[R_B2, :H2].set(p["b_mlp1"][0])
    P = P.at[R_W3:R_W3 + H2, :H4].set(p["w_att"])
    P = P.at[R_B3, :H4].set(p["b_att"][0])
    P = P.at[R_W4, :H4].set(p["w_att1"][:, 0])
    P = P.at[R_W4, H4].set(p["b_att1"][0, 0])
    # Constant 0/1 selection matrices (built on host; avoids in-kernel iota/mod).
    rows = jnp.arange(S * B)
    gb = (rows[None, :] % B == jnp.arange(B)[:, None]).astype(jnp.float32)   # (B, S*B)
    gs = (rows[:, None] // B == jnp.arange(S)[None, :]).astype(jnp.float32)  # (S*B, S)
    P = P.at[R_GB:R_GB + B, :S * B].set(gb)    # rows R_GB+B..R_GB+7 stay zero (sublane pad)
    P = P.at[R_GS:R_GS + S * B, :S].set(gs)
    return P


def init_params(key):
    """Deterministic synthetic weights (normal(0, 0.05), shapes from __init__)."""
    ks = jax.random.split(key, 11)
    std = 0.05
    n = lambda k, shape: (std * jax.random.normal(k, shape)).astype(jnp.float32)
    params = {
        "w_mlp":  n(ks[0], (INPUT_SIZE, HIDDEN)),  # nn.Linear(input_size, hidden) weight^T
        "b_mlp":  n(ks[1], (1, HIDDEN)),
        "w_mlp1": n(ks[2], (HIDDEN, H2)),
        "b_mlp1": n(ks[3], (1, H2)),
        "w_att":  n(ks[4], (H2, H4)),
        "b_att":  n(ks[5], (1, H4)),
        "w_att1": n(ks[6], (H4, 1)),
        "b_att1": n(ks[7], (1, 1)),
        # Present in the module but unused in forward():
        "feature_w1": n(ks[8], (HIDDEN, HIDDEN)),
        "feature_b1": n(ks[9], (1, HIDDEN)),
        "feature_w2": n(ks[10], (HIDDEN, 1)),
    }
    return params


def reference_forward(x_sbd, p):
    """Pure-JAX reference replicating the PyTorch forward (B > 1 branch)."""
    h1 = x_sbd @ p["w_mlp"] + p["b_mlp"][0]
    h2 = h1 @ p["w_mlp1"] + p["b_mlp1"][0]
    a = jnp.tanh(h2 @ p["w_att"] + p["b_att"][0])
    logits = (a @ p["w_att1"] + p["b_att1"][0])[..., 0]   # (S, B)
    sm = jax.nn.softmax(logits, axis=0)                   # (S, B)
    l1 = jnp.sum(jnp.abs(sm))
    out1 = jnp.sum(h2 * sm[..., None], axis=0)[None]      # (1, B, H/2)
    return out1, logits.T, l1                             # (B, S) raw logits


if __name__ == "__main__":
    key = jax.random.PRNGKey(0)
    k_x, k_p = jax.random.split(key)
    x = jax.random.normal(k_x, (S, B, INPUT_SIZE), dtype=jnp.float32)
    params = init_params(k_p)
    p_packed = pack_params(params)        # done once, outside the per-call path

    out1, out_perm, l1 = jax.jit(feature_att_net)(x, p_packed)
    jax.block_until_ready((out1, out_perm, l1))

    r1, r2, r3 = reference_forward(x, params)
    assert out1.shape == (1, B, H2) and out_perm.shape == (B, S)
    assert jnp.allclose(out1, r1, atol=1e-4, rtol=1e-4)
    assert jnp.allclose(out_perm, r2, atol=1e-4, rtol=1e-4)
    assert jnp.allclose(l1, r3, atol=1e-4, rtol=1e-4)

    print("KERNEL_OK")
</pallas_src>

<mosaic_0001>
module attributes {stable_mosaic.version = 11 : i64} {
  func.func @_feature_att_kernel(%arg0: memref<16x16xf32, #tpu.memory_space<vmem>>, %arg1: memref<120x32xf32, #tpu.memory_space<vmem>>, %arg2: memref<8x128xf32, #tpu.memory_space<vmem>>) attributes {dimension_semantics = [], scalar_prefetch = 0 : i64, scratch_operands = 0 : i64, tpu.core_type = #tpu.core_type<tc>} {
    %c0 = arith.constant 0 : index
    %c0_0 = arith.constant 0 : index
    %0 = vector.load %arg0[%c0, %c0_0] : memref<16x16xf32, #tpu.memory_space<vmem>>, vector<16x16xf32>
    %c0_1 = arith.constant 0 : index
    %c0_2 = arith.constant 0 : index
    %1 = vector.load %arg1[%c0_1, %c0_2] : memref<120x32xf32, #tpu.memory_space<vmem>>, vector<16x32xf32>
    %c16 = arith.constant 16 : index
    %c0_3 = arith.constant 0 : index
    %2 = vector.load %arg1[%c16, %c0_3] : memref<120x32xf32, #tpu.memory_space<vmem>>, vector<1x32xf32>
    %c24 = arith.constant 24 : index
    %c0_4 = arith.constant 0 : index
    %3 = vector.load %arg1[%c24, %c0_4] : memref<120x32xf32, #tpu.memory_space<vmem>>, vector<32x16xf32>
    %c56 = arith.constant 56 : index
    %c0_5 = arith.constant 0 : index
    %4 = vector.load %arg1[%c56, %c0_5] : memref<120x32xf32, #tpu.memory_space<vmem>>, vector<1x16xf32>
    %c64 = arith.constant 64 : index
    %c0_6 = arith.constant 0 : index
    %5 = vector.load %arg1[%c64, %c0_6] : memref<120x32xf32, #tpu.memory_space<vmem>>, vector<16x8xf32>
    %c80 = arith.constant 80 : index
    %c0_7 = arith.constant 0 : index
    %6 = vector.load %arg1[%c80, %c0_7] : memref<120x32xf32, #tpu.memory_space<vmem>>, vector<1x8xf32>
    %c88 = arith.constant 88 : index
    %c0_8 = arith.constant 0 : index
    %7 = vector.load %arg1[%c88, %c0_8] : memref<120x32xf32, #tpu.memory_space<vmem>>, vector<1x32xf32>
    %8 = vector.extract_strided_slice %7 {offsets = [0, 0], sizes = [1, 8], strides = [1, 1]} : vector<1x32xf32> to vector<1x8xf32>
    %9 = vector.extract_strided_slice %7 {offsets = [0, 8], sizes = [1, 1], strides = [1, 1]} : vector<1x32xf32> to vector<1x1xf32>
    %c96 = arith.constant 96 : index
    %c0_9 = arith.constant 0 : index
    %10 = vector.load %arg1[%c96, %c0_9] : memref<120x32xf32, #tpu.memory_space<vmem>>, vector<8x16xf32>
    %c104 = arith.constant 104 : index
    %c0_10 = arith.constant 0 : index
    %11 = vector.load %arg1[%c104, %c0_10] : memref<120x32xf32, #tpu.memory_space<vmem>>, vector<16x8xf32>
    %cst = arith.constant dense<0.000000e+00> : vector<16x32xf32>
    %12 = tpu.matmul %0, %1, %cst {dimension_numbers = #tpu.dot_dimension_numbers<[1], [0], [0], [1], [0, 0, 1, 1], [], []>} : vector<16x16xf32>, vector<16x32xf32>, vector<16x32xf32> -> vector<16x32xf32>
    %13 = vector.broadcast %2 : vector<1x32xf32> to vector<16x32xf32>
    %14 = arith.addf %12, %13 : vector<16x32xf32>
    %cst_11 = arith.constant dense<0.000000e+00> : vector<16x16xf32>
    %15 = tpu.matmul %14, %3, %cst_11 {dimension_numbers = #tpu.dot_dimension_numbers<[1], [0], [0], [1], [0, 0, 1, 1], [], []>} : vector<16x32xf32>, vector<32x16xf32>, vector<16x16xf32> -> vector<16x16xf32>
    %16 = vector.broadcast %4 : vector<1x16xf32> to vector<16x16xf32>
    %17 = arith.addf %15, %16 : vector<16x16xf32>
    %cst_12 = arith.constant dense<0.000000e+00> : vector<16x8xf32>
    %18 = tpu.matmul %17, %5, %cst_12 {dimension_numbers = #tpu.dot_dimension_numbers<[1], [0], [0], [1], [0, 0, 1, 1], [], []>} : vector<16x16xf32>, vector<16x8xf32>, vector<16x8xf32> -> vector<16x8xf32>
    %19 = vector.broadcast %6 : vector<1x8xf32> to vector<16x8xf32>
    %20 = arith.addf %18, %19 : vector<16x8xf32>
    %21 = math.tanh %20 : vector<16x8xf32>
    %22 = vector.broadcast %8 : vector<1x8xf32> to vector<16x8xf32>
    %23 = arith.mulf %21, %22 : vector<16x8xf32>
    %cst_13 = arith.constant dense<0.000000e+00> : vector<16xf32>
    %24 = vector.multi_reduction <add>, %23, %cst_13 [1] : vector<16x8xf32> to vector<16xf32>
    %25 = vector.shape_cast %24 : vector<16xf32> to vector<16x1xf32>
    %26 = vector.broadcast %9 : vector<1x1xf32> to vector<16x1xf32>
    %27 = arith.addf %25, %26 : vector<16x1xf32>
    %28 = vector.shape_cast %27 : vector<16x1xf32> to vector<1x16x1xf32>
    %cst_14 = arith.constant dense<0xFF800000> : vector<1xf32>
    %29 = vector.multi_reduction <maximumf>, %28, %cst_14 [1, 2] : vector<1x16x1xf32> to vector<1xf32>
    %30 = vector.shape_cast %29 : vector<1xf32> to vector<1x1x1xf32>
    %31 = vector.extract %30[0, 0, 0] : f32 from vector<1x1x1xf32>
    %32 = vector.broadcast %31 : f32 to vector<16x1xf32>
    %33 = arith.subf %27, %32 : vector<16x1xf32>
    %34 = math.exp %33 : vector<16x1xf32>
    %35 = vector.broadcast %34 : vector<16x1xf32> to vector<16x16xf32>
    %36 = arith.mulf %35, %17 : vector<16x16xf32>
    %37 = vector.broadcast %27 : vector<16x1xf32> to vector<16x8xf32>
    %38 = arith.mulf %37, %11 : vector<16x8xf32>
    %cst_15 = arith.constant 0.000000e+00 : f32
    %39 = vector.broadcast %cst_15 : f32 to vector<16x103xf32>
    %40 = tpu.concatenate %36, %34, %38, %39 in 1 : vector<16x16xf32>, vector<16x1xf32>, vector<16x8xf32>, vector<16x103xf32> -> vector<16x128xf32>
    %cst_16 = arith.constant dense<0.000000e+00> : vector<8x128xf32>
    %41 = tpu.matmul %10, %40, %cst_16 {dimension_numbers = #tpu.dot_dimension_numbers<[1], [0], [0], [1], [0, 0, 1, 1], [], []>} : vector<8x16xf32>, vector<16x128xf32>, vector<8x128xf32> -> vector<8x128xf32>
    %42 = vector.extract_strided_slice %41 {offsets = [0, 16], sizes = [8, 1], strides = [1, 1]} : vector<8x128xf32> to vector<8x1xf32>
    %cst_17 = arith.constant 0.000000e+00 : f32
    %43 = vector.broadcast %cst_17 : f32 to vector<8x1xf32>
    %44 = arith.cmpf oeq, %42, %43 : vector<8x1xf32>
    %cst_18 = arith.constant 1.000000e+00 : f32
    %45 = vector.broadcast %cst_18 : f32 to vector<8x1xf32>
    %46 = arith.select %44, %45, %42 : vector<8x1xi1>, vector<8x1xf32>
    %cst_19 = arith.constant 1.000000e+00 : f32
    %47 = vector.broadcast %cst_19 : f32 to vector<8x1xf32>
    %48 = arith.divf %47, %46 : vector<8x1xf32>
    %49 = tpu.iota {dimensions = array<i32: 1>} : vector<8x128xi32>
    %c16_i32 = arith.constant 16 : i32
    %50 = vector.broadcast %c16_i32 : i32 to vector<8x128xi32>
    %51 = arith.cmpi slt, %49, %50 : vector<8x128xi32>
    %cst_20 = arith.constant 1.000000e+00 : f32
    %52 = vector.shape_cast %48 : vector<8x1xf32> to vector<8x1xf32>
    %53 = vector.broadcast %52 : vector<8x1xf32> to vector<8x128xf32>
    %54 = vector.broadcast %cst_20 : f32 to vector<8x128xf32>
    %55 = arith.select %51, %53, %54 : vector<8x128xi1>, vector<8x128xf32>
    %56 = arith.mulf %41, %55 : vector<8x128xf32>
    %c0_21 = arith.constant 0 : index
    %c0_22 = arith.constant 0 : index
    %57 = vector.load %arg2[%c0_21, %c0_22] : memref<8x128xf32, #tpu.memory_space<vmem>>, vector<8x128xf32>
    tpu.vector_store %arg2[%c0_21, %c0_22], %56 {strides = array<i32>} : memref<8x128xf32, #tpu.memory_space<vmem>>, vector<8x128xf32>,
    return
  }
}

</mosaic_0001>

<bundles_post_ra>
// kernel: feature_att_net.1
= control target key start
LH: loop header
LB: loop body
LE: loop exit
PB: predicated region body
PF: predicated region fallthrough
CT: control target
= control target key end

     0   :  { %vm32_vm0 = vcmask 130048   ;;  %vm118_vm1 = vcmask 261120   ;;  %vm293_vm2 = vcmask 64512   ;;  %v544_v32 = vmov 8   ;;  %s545_s10 = smov 17   ;;  %s547_s12 = smov 8   ;;  %s634_s1 = inlined_call_operand.vmem [shape: f32[120,32], index: 1, kind: input, shape index: {}]   ;;  %s635_s0 = inlined_call_operand.vmem [shape: f32[16,16], index: 0, kind: input, shape index: {}]   ;;  %s636_s2 = inlined_call_operand.vmem [shape: f32[8,128], index: 2, kind: output, shape index: {}]  }
   0x1   :  { %v14_v0 = vld [vmem:[%s634_s1 + $0x8] sm:$0xff]  ;;  %v13_v1 = vld [vmem:[%s634_s1] sm:$0xff]  ;;  %v19_v3 = vld [vmem:[%s634_s1 + $0x30] sm:$0xff]  ;;  %531 = vset.pattern.permute.xlu0 %v544_v32  ;;  %530 = vset.pattern.permute.xlu1 %v544_v32  ;;  %vm302_vm3 = vcmask 72768   ;;  %v546_v57 = vmov 0.0   ;;  %vm548_vm4 = vmmov 0  }
   0x2   :  { %v11_v2 = vld [vmem:[%s635_s0] sm:$0xff]  ;;  %490 = vmatprep.subr.mxu0 %v14_v0  ;;  %v12_v4 = vld [vmem:[%s635_s0 + $0x8] sm:$0xff]  ;;  %497 = vmatprep.subr.mxu1 %v19_v3  ;;  %v16_v7 = vld [vmem:[%s634_s1 + $0x18] sm:$0xff]  ;;  %vm362_vm5 = vcmask 138240   ;;  %vm365_vm6 = vcmask 203776  }
   0x3   :  { %494 = vmatprep.mubr.msk.f32.mxu0 %vm32_vm0, %v11_v2  ;;  %491 = vmatpush3.msra.mxu0 %v14_v0  ;;  %v18_v5 = vld [vmem:[%s634_s1 + $0x28] sm:$0xff]  ;;  %v17_v6 = vld [vmem:[%s634_s1 + $0x20] sm:$0xff]  ;;  %v460_v9 = vld [vmem:[%s634_s1 + $0x10] ss:$0 sm:$0xff] }
   0x4   :  { %492 = vmatprep.subr.mxu0 %v13_v1  ;;  %498 = vmatpush3.msra.mxu1 %v19_v3  ;;  %v22_v13 = vld [vmem:[%s634_s1 + $0x48] sm:$0xff]  ;;  %v21_v14 = vld [vmem:[%s634_s1 + $0x40] sm:$0xff]  ;;  %v463_v16 = vld [vmem:[%s634_s1 + $0x38] ss:$0 sm:$0xff] }
   0x5   :  { %493 = vmatpush3.msra.mxu0 %v13_v1  ;;  %499 = vmatprep.subr.mxu1 %v18_v5  ;;  %v466_v20 = vld [vmem:[%s634_s1 + $0x50] ss:$0 sm:$0xff]  ;;  %v469_v27 = vld [vmem:[%s634_s1 + $0x58] ss:$0 sm:$0xff]  ;;  %v26_v58 = vld [vmem:[%s634_s1 + $0x68] sm:$0xff] }
   0x6   :  { %495 = vmatmul.mubr.msk.f32.vlgmr.msra.gmra.mxu0 %vm32_vm0, %v12_v4  ;;  %500 = vmatpush3.msra.mxu1 %v18_v5  ;;  %v27_v42 = vld [vmem:[%s634_s1 + $0x70] sm:$0xff] }
   0x7   :  { %501 = vmatprep.subr.mxu1 %v17_v6  ;;  %508 = vmatprep.subr.mxu0 %v22_v13 }
   0x8   :  { %502 = vmatpush3.msra.mxu1 %v17_v6  ;;  %509 = vmatpush3.msra.mxu0 %v22_v13 }
   0x9   :  { %503 = vmatprep.subr.mxu1 %v16_v7  ;;  %510 = vmatprep.subr.mxu0 %v21_v14 }
   0xa   :  { %504 = vmatpush3.msra.mxu1 %v16_v7  ;;  %511 = vmatpush3.msra.mxu0 %v21_v14 }
   0xb   :  { %515 = vmatprep.subr.mxu0 %v546_v57 }
  0xc6   :  { %v496_v8 = vpop.f32.mrf.mxu0 }
  0xc7   :  { %v111_v12 = vadd.f32 %v496_v8, %v460_v9  ;;  %v25_v8 = vld [vmem:[%s634_s1 + $0x60] sm:$0xff] }
  0xc8   :  { %v105_v10 = vpop.f32.mrf.mxu0 }
  0xc9   :  { %v106_v11 = vadd.f32 %v460_v9, %v105_v10  ;;  %v549_v10 = vmov 16  }
  0xcb   :  { %505 = vmatprep.mubr.msk.f32.mxu1 %vm118_vm1, %v106_v11 }
  0xcc   :  { %506 = vmatmul.mubr.msk.f32.vlgmr.msra.gmra.mxu1 %vm118_vm1, %v111_v12 }
 0x18c   :  { %v507_v15 = vpop.f32.mrf.mxu1 }
 0x18d   :  { %v605_v19 = vadd.f32 %v507_v15, %v463_v16  ;;  %v445_v15 = vlaneseq }
 0x18e   :  { %v191_v17 = vpop.f32.mrf.mxu1 }
 0x18f   :  { %v603_v18 = vadd.f32 %v463_v16, %v191_v17  ;;  %v446_v16 = vand.u32 127, %v445_v15 }
 0x191   :  { %512 = vmatprep.mubr.msk.f32.mxu0 %vm32_vm0, %v603_v18  ;;  %vm447_vm8 = vcmp.lt.s32.totalorder %v446_v16, 16 }
 0x192   :  { %513 = vmatmul.mubr.msk.f32.vlgmr.msra.gmra.mxu0 %vm32_vm0, %v605_v19 }
 0x193   :  { %519 = vmatprep.mubr.msk.f32.mxu0 %vm548_vm4, %v546_v57 }
 0x252   :  { %v514_v21 = vpop.f32.mrf.mxu0 }
 0x253   :  { %v282_v22 = vadd.f32 %v514_v21, %v466_v20 }
 0x254   :  { %v276_v23 = vpop.f32.mrf.mxu0 }
 0x255   :  { %v277_v24 = vadd.f32 %v466_v20, %v276_v23  ;;  %534 = vtanh.f32 %v282_v22 }
 0x257   :  { %536 = vtanh.f32 %v277_v24 }
 0x262   :  { %v535_v25 = vpop.eup %534 }
 0x263   :  { %v292_v30 = vmul.f32 %v535_v25, %v469_v27 }
 0x264   :  { %v537_v26 = vpop.eup %536 }
 0x265   :  { %v291_v28 = vmul.f32 %v537_v26, %v469_v27  ;;  %v297_v31 = vsel %vm293_vm2, %v292_v30, 0.0 }
 0x267   :  { %v294_v29 = vsel %vm293_vm2, %v291_v28, 0.0 }
 0x268   :  { %295 = vadd.xlane.f32.xlu0 %v294_v29 }
 0x26c   :  { %298 = vadd.xlane.f32.xlu0 %v297_v31 }
 0x2f1   :  { %v296_v33 = vpop.xlane.xlu0 %295 }
 0x2f2   :  { %v300_v34 = vadd.f32 %v469_v27, %v296_v33 }
 0x2f4   :  { %336 = vperm.xlu0 %531, %v300_v34   ;;  %v303_v37 = vsel %vm302_vm3, %v300_v34, -inf }
 0x2f5   :  { %v299_v35 = vpop.xlane.xlu0 %298 }
 0x2f6   :  { %v301_v36 = vadd.f32 %v469_v27, %v299_v35 }
 0x2f8   :  { %v304_v38 = vsel %vm302_vm3, %v301_v36, -inf  ;;  %533 = vset.pattern.permute.xlu0 %v549_v10 }
 0x2f9   :  { %v305_v39 = vmax.f32 %v303_v37, %v304_v38 }
 0x2fb   :  { %306 = vmax.xlane.f32.xlu1 %v305_v39 }
 0x30c   :  { %341 = vperm.xlu1 %530, %v301_v36  }
 0x36f   :  { %v337_v59 = vpop.permute.xlu0 %336 }
 0x370   :  { %v344_v60 = vmul.f32 %v337_v59, %v26_v58 }
 0x384   :  { %v307_v40 = vpop.xlane.xlu1 %306 }
 0x385   :  { %v308_v41 = vrot.slane %v307_v40, 4 }
 0x387   :  { %v309_v43 = vmax.f32 %v307_v40, %v308_v41 }
 0x388   :  { %v342_v44 = vpop.permute.xlu1 %341 }
 0x389   :  { %v310_v45 = vrot.slane %v309_v43, 2  ;;  %v345_v46 = vmul.f32 %v342_v44, %v27_v42 }
 0x38b   :  { %356 = vrot.lane.b32.xlu1 %v345_v46, %s545_s10  ;;  %v311_v47 = vmax.f32 %v309_v43, %v310_v45 }
 0x38d   :  { %v312_v48 = vrot.slane %v311_v47, 1 }
 0x38f   :  { %v313_v49 = vmax.f32 %v311_v47, %v312_v48 }
 0x391   :  { %522 = vpush %v313_v49 }
 0x3c2   :  { %s523_s11 = spop %522 }
 0x3c3   :  { %v315_v50 = vstv %s523_s11 }
 0x3c4   :  { %v317_v51 = vsub.f32 %v301_v36, %v315_v50  ;;  %v316_v52 = vsub.f32 %v300_v34, %v315_v50 }
 0x3c6   :  { %v320_v53 = vmul.f32 1.442695, %v317_v51  ;;  %v318_v54 = vmul.f32 1.442695, %v316_v52 }
 0x3c8   :  { %538 = vpow2.f32 %v320_v53 }
 0x3c9   :  { %540 = vpow2.f32 %v318_v54 }
 0x3d5   :  { %v539_v55 = vpop.eup %538 }
 0x3d6   :  { %329 = vperm.xlu1 %530, %v539_v55   ;;  %v541_v56 = vpop.eup %540 }
 0x3da   :  { %324 = vperm.xlu1 %530, %v541_v56  }
 0x3de   :  { %348 = vrot.lane.b32.xlu1 %v539_v55, %s547_s12 }
 0x3df   :  { %532 = vset.pattern.permute.xlu1 %v549_v10 }
 0x3e2   :  { %346 = vrot.lane.b32.xlu1 %v541_v56, %s547_s12 }
 0x3e6   :  { %354 = vrot.lane.b32.xlu1 %v344_v60, %s545_s10 }
 0x3fd   :  { %v357_v61 = vpop.permute.xlu1 %356 }
 0x451   :  { %v330_v62 = vpop.permute.xlu1 %329 }
 0x452   :  { %v333_v0 = vmul.f32 %v330_v62, %v605_v19 }
 0x455   :  { %v325_v63 = vpop.permute.xlu1 %324 }
 0x456   :  { %v332_v5 = vmul.f32 %v325_v63, %v603_v18 }
 0x459   :  { %v349_v1 = vpop.permute.xlu1 %348 }
 0x45a   :  { %v361_v2 = vsel %vm32_vm0, %v333_v0, %v349_v1 }
 0x45b   :  { %v364_v3 = vsel %vm362_vm5, %v361_v2, %v357_v61 }
 0x45c   :  { %516 = vmatpush3.msk.msra.mxu0 %vm365_vm6, %v364_v3 }
 0x45d   :  { %v347_v4 = vpop.permute.xlu1 %346  ;;  %517 = vmatprep.subr.mxu0 %v546_v57 }
 0x45e   :  { %v360_v6 = vsel %vm32_vm0, %v332_v5, %v347_v4 }
 0x461   :  { %v355_v7 = vpop.permute.xlu1 %354 }
 0x462   :  { %v363_v9 = vsel %vm362_vm5, %v360_v6, %v355_v7 }
 0x463   :  { %518 = vmatpush3.msk.msra.mxu0 %vm365_vm6, %v363_v9 }
 0x464   :  { %520 = vmatmul.mubr.msk.f32.vlgmr.msra.gmra.mxu0 %vm32_vm0, %v25_v8 }
 0x524   :  { %v437_v11 = vpop.f32.mrf.mxu0 }
 0x525   :  { %vm441_vm7 = vcmp.eq.f32.partialorder %v437_v11, 0.0 }
 0x526   :  { %v442_v12 = vsel %vm441_vm7, 1.0, %v437_v11  ;;  %v521_v13 = vpop.f32.mrf.mxu0 }
 0x527   :  { %542 = vrcp.f32 %v442_v12 }
 0x534   :  { %v543_v14 = vpop.eup %542 }
 0x535   :  { %450 = vperm.xlu1 %532, %v543_v14  }
 0x5b0   :  { %v451_v17 = vpop.permute.xlu1 %450 }
 0x5b1   :  { %v453_v18 = vsel %vm447_vm8, %v451_v17, 1.0 }
 0x5b2   :  { %v454_v19 = vmul.f32 %v453_v18, %v437_v11 }
 0x5b4   :  { %455 = vst [vmem:[%s636_s2] sm:$0xff] %v454_v19 }

</bundles_post_ra>
